<compile_context>
chip_gen: v6e
topology: v6e:2x2x1
jax: 0.10.0
libtpu: 0.0.40
codegen_flags: <defaults>
</compile_context>

<pallas_src>
import functools

import jax
import jax.numpy as jnp
from jax.experimental import pallas as pl
from jax.experimental.pallas import tpu as pltpu


def _zeropad2d_kernel(x_ref, o_ref, *, pad):
    """Build the padded block in registers; single aligned full-block store."""
    cb, h, w = x_ref.shape
    _, ho, wo = o_ref.shape
    dt = o_ref.dtype

    x = x_ref[...]
    # Lane (W) padding: full-width rows, value-side concat (XLU/VPU slots).
    zcols = jnp.zeros((cb, h, pad), dt)
    rows = jnp.concatenate([zcols, x, zcols], axis=2)        # (cb, h, wo)
    # Sublane (H) padding: full padded block in registers.
    zrows = jnp.zeros((cb, pad, wo), dt)
    block = jnp.concatenate([zrows, rows, zrows], axis=1)    # (cb, ho, wo)

    # One unmasked, (8,128)-aligned, offset-0 store: every output vreg written
    # exactly once.  No masked vst.msk, no store-side relayout.
    o_ref[...] = block


def _tpu_topology():
    """Best-effort (tensorcores_per_chip, vmem_bytes_per_core) with safe fallbacks."""
    vmem = None
    cores = None
    try:
        info = pltpu.get_tpu_info()
        for attr in ("vmem_capacity_bytes", "vmem_bytes", "vmem_size_bytes"):
            v = getattr(info, attr, None)
            if isinstance(v, int) and v > 0:
                vmem = v
                break
        for attr in ("num_tensorcores", "tensorcores_per_chip", "num_cores",
                     "cores_per_chip"):
            c = getattr(info, attr, None)
            if isinstance(c, int) and c > 0:
                cores = c
                break
    except Exception:
        pass
    if vmem is None or cores is None:
        kind = ""
        try:
            kind = jax.devices()[0].device_kind.lower()
        except Exception:
            pass
        is_v7 = "7" in kind
        if cores is None:
            cores = 2 if is_v7 else 1
        if vmem is None:
            vmem = (64 << 20) if is_v7 else (128 << 20)
    return cores, vmem


def zero_pad_2d(x, padding: int):
    """Pallas implementation of ZeroPad2d.forward for a (C, H, W) tensor."""
    if padding <= 0:
        # Parity with the exercise module: padding == 0 (or negative) -> x unchanged.
        return x

    C, H, W = x.shape
    Ho, Wo = H + 2 * padding, W + 2 * padding
    itemsize = jnp.dtype(x.dtype).itemsize

    num_tc, vmem_cap = _tpu_topology()

    # Per-generation block budget for the *double-buffered* in+out footprint:
    #   v5e/v6e (128 MiB VMEM): ~48 MiB;  v7x (64 MiB VMEM): ~24 MiB.
    budget = min(48 << 20, max(8 << 20, vmem_cap * 3 // 8))

    # Channels per block, sized so 2*(in_block + out_block) fits the budget.
    bytes_per_channel_db = 2 * (H * W + Ho * Wo) * itemsize
    cb = max(1, min(C, budget // max(1, bytes_per_channel_db)))
    # Only split for megacore sharding when the chip actually has >1 TensorCore.
    if num_tc >= 2 and C >= num_tc:
        cb = min(cb, pl.cdiv(C, num_tc))
    # Ragged final block (Pallas masks partial out-of-bounds blocks) — no
    # divisor-of-C shrink loop, so prime C keeps the VMEM-optimal block size.
    grid = (pl.cdiv(C, cb),)

    # TODO(synk): add H-axis tiling for feature maps where a single (1, Ho, Wo)
    # channel block (and, for Wo < 128, a lane-dense flattened (C, Ho*Wo) output)
    # exceeds the VMEM budget; current shapes fit comfortably.

    # vmem limit derived from real usage (double-buffered blocks) + headroom.
    block_bytes = cb * (H * W + Ho * Wo) * itemsize
    vmem_limit = min(max(2 * block_bytes + (2 << 20), 8 << 20), vmem_cap)

    kernel = functools.partial(_zeropad2d_kernel, pad=padding)

    return pl.pallas_call(
        kernel,
        out_shape=jax.ShapeDtypeStruct((C, Ho, Wo), x.dtype),
        grid_spec=pltpu.PrefetchScalarGridSpec(
            num_scalar_prefetch=0,
            grid=grid,
            # Trailing dims span the full array, so the (8, 128) divisibility
            # rule does not apply even for small / odd H, W.
            in_specs=[pl.BlockSpec((cb, H, W), lambda i: (i, 0, 0))],
            out_specs=pl.BlockSpec((cb, Ho, Wo), lambda i: (i, 0, 0)),
        ),
        compiler_params=pltpu.CompilerParams(
            dimension_semantics=("parallel",),
            vmem_limit_bytes=int(vmem_limit),
        ),
        cost_estimate=pl.CostEstimate(
            flops=0,
            transcendentals=0,
            bytes_accessed=itemsize * (C * H * W + C * Ho * Wo),
        ),
    )(x)


if __name__ == "__main__":
    key = jax.random.PRNGKey(0)

    # Shapes consistent with the module's (C, H, W) forward.
    C, H, W = 4, 16, 16
    padding = 2
    x = jax.random.normal(key, (C, H, W), dtype=jnp.float32)

    out = jax.block_until_ready(zero_pad_2d(x, padding))
    ref = jnp.pad(x, ((0, 0), (padding, padding), (padding, padding)))
    assert out.shape == (C, H + 2 * padding, W + 2 * padding), out.shape
    assert out.dtype == x.dtype
    assert jnp.allclose(out, ref), "mismatch vs reference zero-padding"

    # Ragged-channel-block path (prime C) + different padding.
    x2 = jax.random.normal(jax.random.PRNGKey(0), (5, 16, 16), dtype=jnp.float32)
    out2 = jax.block_until_ready(zero_pad_2d(x2, 1))
    ref2 = jnp.pad(x2, ((0, 0), (1, 1), (1, 1)))
    assert jnp.allclose(out2, ref2), "mismatch vs reference (ragged block path)"

    # padding == 0 fast path (module returns x unchanged).
    out0 = jax.block_until_ready(zero_pad_2d(x, 0))
    assert jnp.array_equal(out0, x)

    print("KERNEL_OK")
</pallas_src>

<mosaic_0001>
module attributes {stable_mosaic.version = 11 : i64} {
  func.func @_zeropad2d_kernel(%arg0: i32, %arg1: memref<4x16x16xf32, #tpu.memory_space<vmem>>, %arg2: memref<4x20x20xf32, #tpu.memory_space<vmem>>) attributes {dimension_semantics = [#tpu.dimension_semantics<parallel>], iteration_bounds = array<i64: 1>, scalar_prefetch = 0 : i64, scratch_operands = 0 : i64, tpu.core_type = #tpu.core_type<tc>, window_params = [{transform_indices = @transform_0, window_bounds = array<i64: 4, 16, 16>}, {transform_indices = @transform_1, window_bounds = array<i64: 4, 20, 20>}]} {
    %c0 = arith.constant 0 : index
    %c0_0 = arith.constant 0 : index
    %c0_1 = arith.constant 0 : index
    %0 = vector.load %arg1[%c0, %c0_0, %c0_1] : memref<4x16x16xf32, #tpu.memory_space<vmem>>, vector<4x16x16xf32>
    %cst = arith.constant 0.000000e+00 : f32
    %1 = vector.broadcast %cst : f32 to vector<4x16x2xf32>
    %2 = tpu.concatenate %1, %0, %1 in 2 : vector<4x16x2xf32>, vector<4x16x16xf32>, vector<4x16x2xf32> -> vector<4x16x20xf32>
    %cst_2 = arith.constant 0.000000e+00 : f32
    %3 = vector.broadcast %cst_2 : f32 to vector<4x2x20xf32>
    %4 = tpu.concatenate %3, %2, %3 in 1 : vector<4x2x20xf32>, vector<4x16x20xf32>, vector<4x2x20xf32> -> vector<4x20x20xf32>
    %c0_3 = arith.constant 0 : index
    %c0_4 = arith.constant 0 : index
    %c0_5 = arith.constant 0 : index
    %5 = vector.load %arg2[%c0_3, %c0_4, %c0_5] : memref<4x20x20xf32, #tpu.memory_space<vmem>>, vector<4x20x20xf32>
    tpu.vector_store %arg2[%c0_3, %c0_4, %c0_5], %4 {strides = array<i32>} : memref<4x20x20xf32, #tpu.memory_space<vmem>>, vector<4x20x20xf32>,
    return
  }
  func.func @transform_0(%arg0: i32) -> (i32, i32, i32) {
    %c0_i32 = arith.constant 0 : i32
    %c0_i32_0 = arith.constant 0 : i32
    %c0_i32_1 = arith.constant 0 : i32
    return %arg0, %c0_i32, %c0_i32_0 : i32, i32, i32
  }
  func.func @transform_1(%arg0: i32) -> (i32, i32, i32) {
    %c0_i32 = arith.constant 0 : i32
    %c0_i32_0 = arith.constant 0 : i32
    %c0_i32_1 = arith.constant 0 : i32
    return %arg0, %c0_i32, %c0_i32_0 : i32, i32, i32
  }
}

</mosaic_0001>

<bundles_post_ra>
// kernel: tpu_custom_call.1
= control target key start
LH: loop header
LB: loop body
LE: loop exit
PB: predicated region body
PF: predicated region fallthrough
CT: control target
= control target key end

     0   :  { %6 = vsyncpa [#allocation3], 0  ;;  %s166_s6 = smov [#allocation2]   ;;  %s259_s0 = inlined_call_operand.hbm [shape: f32[4,16,16], index: 0, kind: input, shape index: {}]   ;;  %s260_s1 = inlined_call_operand.vmem [shape: f32[4,20,20], index: 1, kind: output, shape index: {}]  }
   0x1   :  { %s12_s7 = sshll.u32 %s166_s6, 4  ;;  %s13_s7 = int_to_ptr.vmem [resolvable:$true] %s12_s7 }
   0x2   :  { %s152_s8 = scalar_lea.vmem %s13_s7, 1024  ;;  %p157_p1 = scmp.lt.s32.totalorder %s13_s7, %s13_s7 }
   0x3   :  { %p153_p0 = scmp.ne.s32.totalorder %s13_s7, %s152_s8  ;;  %p158_p2 = scmp.lt.s32.totalorder %s152_s8, %s152_s8 }
   0x5   :  { %p159_p3 = por %p158_p2, %p157_p1 }
   0x7   :  { %p160_p4 = pnand %p159_p3, %p153_p0 }
   0x9   :  { %163 = shalt.err (!%p160_p4)
}
   0xa   :  { %s167_s9 = smov 128   ;;  %s168_s10 = smov 8  }
   0xb   :  { %18 = dma.hbm_to_vmem [thread:$0]  %s259_s0, 1024, %s13_s7, [#allocation3], %s167_s9, %s167_s9, %s168_s10  }
   0xc   :  { %164 = dma.done.wait [#allocation3], 1024  }
   0xd   :  { %165 = vsyncadd [#allocation3], 4294966272  ;;  %v24_v0 = vld [vmem:[#allocation2 + $0x10] sm:$0xff]  ;;  %v22_v1 = vld [vmem:[#allocation2] sm:$0xff]  ;;  %s169_s13 = smov 2   ;;  %vm62_vm0 = vcmask 15360  }
   0xe   :  { %42 = vrot.lane.b32.xlu1 %v24_v0, %s169_s13  ;;  %38 = vrot.lane.b32.xlu0 %v22_v1, %s169_s13  ;;  %v25_v2 = vld [vmem:[#allocation2 + $0x18] sm:$0xff]  ;;  %v23_v3 = vld [vmem:[#allocation2 + $0x8] sm:$0xff]  ;;  %v26_v5 = vld [vmem:[#allocation2 + $0x20] sm:$0xff]  ;;  %vm71_vm1 = vcmask 146432   ;;  %vm88_vm2 = vcmask 1041408   ;;  %vm121_vm3 = vcmask 162816  }
   0xf   :  { %v27_v4 = vld [vmem:[#allocation2 + $0x28] sm:$0xff]  ;;  %v29_v6 = vld [vmem:[#allocation2 + $0x38] sm:$0xff]  ;;  %v28_v7 = vld [vmem:[#allocation2 + $0x30] sm:$0xff]  ;;  %vm124_vm4 = vcmask 158720  }
  0x12   :  { %44 = vrot.lane.b32.xlu1 %v25_v2, %s169_s13  ;;  %40 = vrot.lane.b32.xlu0 %v23_v3, %s169_s13 }
  0x16   :  { %48 = vrot.lane.b32.xlu1 %v27_v4, %s169_s13  ;;  %46 = vrot.lane.b32.xlu0 %v26_v5, %s169_s13 }
  0x1a   :  { %52 = vrot.lane.b32.xlu1 %v29_v6, %s169_s13  ;;  %50 = vrot.lane.b32.xlu0 %v28_v7, %s169_s13 }
  0x80   :  { %v43_v8 = vpop.permute.xlu1 %42  ;;  %v39_v9 = vpop.permute.xlu0 %38 }
  0x81   :  { %v65_v10 = vsel %vm62_vm0, 0.0, %v43_v8  ;;  %v63_v11 = vsel %vm62_vm0, 0.0, %v39_v9 }
  0x82   :  { %v74_v12 = vsel %vm71_vm1, %v65_v10, 0.0  ;;  %v72_v13 = vsel %vm71_vm1, %v63_v11, 0.0 }
  0x83   :  { %v92_v14 = vrot.slane %v74_v12, 6  ;;  %v89_v15 = vrot.slane %v72_v13, 6 }
  0x84   :  { %v45_v16 = vpop.permute.xlu1 %44  ;;  %v41_v17 = vpop.permute.xlu0 %40 }
  0x85   :  { %v114_v18 = vsel %vm88_vm2, 0.0, %v92_v14  ;;  %v113_v19 = vsel %vm88_vm2, 0.0, %v89_v15  ;;  %v66_v20 = vsel %vm62_vm0, 0.0, %v45_v16  ;;  %v64_v21 = vsel %vm62_vm0, 0.0, %v41_v17 }
  0x86   :  { %126 = vst.msk [vmem:[%s260_s1 + $0x18] sm:$0xff] %vm121_vm3, %v114_v18  ;;  %122 = vst.msk [vmem:[%s260_s1] sm:$0xff] %vm121_vm3, %v113_v19  ;;  %v75_v22 = vsel %vm71_vm1, %v66_v20, 0.0  ;;  %v73_v23 = vsel %vm71_vm1, %v64_v21, 0.0 }
  0x87   :  { %v93_v24 = vrot.slane %v75_v22, 6  ;;  %v90_v25 = vrot.slane %v73_v23, 6 }
  0x88   :  { %v49_v26 = vpop.permute.xlu1 %48  ;;  %v47_v27 = vpop.permute.xlu0 %46 }
  0x89   :  { %v94_v28 = vsel %vm88_vm2, %v92_v14, %v93_v24  ;;  %v118_v29 = vsel %vm88_vm2, %v93_v24, 0.0  ;;  %v91_v30 = vsel %vm88_vm2, %v89_v15, %v90_v25  ;;  %v117_v31 = vsel %vm88_vm2, %v90_v25, 0.0 }
  0x8a   :  { %127 = vst.msk [vmem:[%s260_s1 + $0x20] sm:$0xff] %vm121_vm3, %v94_v28  ;;  %123 = vst.msk [vmem:[%s260_s1 + $0x8] sm:$0xff] %vm121_vm3, %v91_v30  ;;  %v68_v32 = vsel %vm62_vm0, 0.0, %v49_v26  ;;  %v67_v33 = vsel %vm62_vm0, 0.0, %v47_v27 }
  0x8b   :  { %128 = vst.msk [vmem:[%s260_s1 + $0x28] sm:$0xf] %vm124_vm4, %v118_v29  ;;  %125 = vst.msk [vmem:[%s260_s1 + $0x10] sm:$0xf] %vm124_vm4, %v117_v31  ;;  %v77_v34 = vsel %vm71_vm1, %v68_v32, 0.0  ;;  %v76_v35 = vsel %vm71_vm1, %v67_v33, 0.0 }
  0x8c   :  { %v96_v36 = vrot.slane %v77_v34, 6  ;;  %v95_v37 = vrot.slane %v76_v35, 6  ;;  %v53_v38 = vpop.permute.xlu1 %52  ;;  %v51_v39 = vpop.permute.xlu0 %50 }
  0x8d   :  { %v70_v40 = vsel %vm62_vm0, 0.0, %v53_v38  ;;  %v69_v41 = vsel %vm62_vm0, 0.0, %v51_v39 }
  0x8e   :  { %v119_v42 = vsel %vm88_vm2, %v96_v36, 0.0  ;;  %v97_v43 = vsel %vm88_vm2, %v95_v37, %v96_v36  ;;  %v115_v44 = vsel %vm88_vm2, 0.0, %v95_v37  ;;  %v79_v45 = vsel %vm71_vm1, %v70_v40, 0.0 }
  0x8f   :  { %131 = vst.msk [vmem:[%s260_s1 + $0x40] sm:$0xf] %vm124_vm4, %v119_v42  ;;  %v99_v46 = vrot.slane %v79_v45, 6  ;;  %v78_v47 = vsel %vm71_vm1, %v69_v41, 0.0 }
  0x90   :  { %129 = vst.msk [vmem:[%s260_s1 + $0x30] sm:$0xff] %vm121_vm3, %v115_v44  ;;  %130 = vst.msk [vmem:[%s260_s1 + $0x38] sm:$0xff] %vm121_vm3, %v97_v43  ;;  %v98_v48 = vrot.slane %v78_v47, 6 }
  0x91   :  { %v120_v49 = vsel %vm88_vm2, %v99_v46, 0.0 }
  0x92   :  { %134 = vst.msk [vmem:[%s260_s1 + $0x58] sm:$0xf] %vm124_vm4, %v120_v49  ;;  %v100_v50 = vsel %vm88_vm2, %v98_v48, %v99_v46  ;;  %v116_v51 = vsel %vm88_vm2, 0.0, %v98_v48 }
  0x93   :  { %132 = vst.msk [vmem:[%s260_s1 + $0x48] sm:$0xff] %vm121_vm3, %v116_v51  ;;  %133 = vst.msk [vmem:[%s260_s1 + $0x50] sm:$0xff] %vm121_vm3, %v100_v50 }
  0x94   :  { %139 = vsyncpa [#allocation3], 1 }

</bundles_post_ra>
